<compile_context>
chip_gen: v6e
topology: v6e:2x2x1
jax: 0.10.0
libtpu: 0.0.40
codegen_flags: <defaults>
</compile_context>

<pallas_src>
import functools

import jax
import jax.numpy as jnp
from jax import lax
from jax.experimental import pallas as pl
from jax.experimental.pallas import tpu as pltpu

PAD = 128          # fused / lane-dense output width: [softmax(C) | sigmoid(1) | zero-pad]
H1, H2 = 256, 128  # hidden sizes fixed by the PyTorch module


def _round_up(n, m):
    return ((n + m - 1) // m) * m


def classifier_kernel(num_classes,
                      x_ref, w1_ref, b1_ref, w2_ref, b2_ref, w34_ref, b34_ref,
                      out_ref):
    # x arrives f32; cast to bf16 on the VPU right before the MXU (avoids a
    # wrapper-side full-array pad+cast HBM round trip).
    x = x_ref[...].astype(jnp.bfloat16)

    # fc1: Linear(in, 256) + ReLU ; Linear(256, 128) + ReLU.
    # bf16 MXU operands, f32 accumulation / bias-add / activations.
    h = jnp.dot(x, w1_ref[...], preferred_element_type=jnp.float32)
    h = jnp.maximum(h + b1_ref[...], 0.0)
    h = jnp.dot(h.astype(jnp.bfloat16), w2_ref[...],
                preferred_element_type=jnp.float32)
    h = jnp.maximum(h + b2_ref[...], 0.0)

    # Fused fc2|fc3: a single lane-dense 128-wide MXU pass.
    logits = jnp.dot(h.astype(jnp.bfloat16), w34_ref[...],
                     preferred_element_type=jnp.float32)
    logits = logits + b34_ref[...]

    col = lax.broadcasted_iota(jnp.int32, logits.shape, 1)
    is_soft = col < num_classes        # softmax lanes [0, C)
    is_sig = col == num_classes        # single sigmoid lane

    # Single fused exp over the (TM, 128) slab:
    #   softmax lanes -> logits - rowmax ; sigmoid lane -> -|logit| ; pad -> -1e30.
    # exp(-1e30) underflows to exactly 0.0, so padded lanes need no extra select.
    m = jnp.max(jnp.where(is_soft, logits, -1e30), axis=-1, keepdims=True)
    arg = jnp.where(is_soft, logits - m,
                    jnp.where(is_sig, -jnp.abs(logits), -1e30))
    e = jnp.exp(arg)

    # One reciprocal serves both the softmax and the (numerically stable) sigmoid:
    #   cols < C : e / sum_valid(e)
    #   col == C : where(logit >= 0, 1, e) / (1 + e)         (e = exp(-|logit|))
    #   pad      : 0 / sum_valid(e) = 0
    soft_sum = jnp.sum(jnp.where(is_soft, e, 0.0), axis=-1, keepdims=True)
    numer = jnp.where(is_sig & (logits >= 0.0), 1.0, e)
    denom = jnp.where(is_sig, 1.0 + e, soft_sum)
    out_ref[...] = (numer * pl.reciprocal(denom, approx=True)).astype(out_ref.dtype)


def prepare_params(params):
    """One-time (per model) fusion of fc2/fc3 + bf16 weight casts.

    Hoisted off the per-call path so no HBM arrays are re-materialized per forward.
    """
    w3, b3, w4, b4 = params["w3"], params["b3"], params["w4"], params["b4"]
    C = w3.shape[1]
    assert C + 1 <= PAD, "num_classes must fit in the 128-lane fused output"

    w34 = jnp.zeros((w3.shape[0], PAD), jnp.float32)
    w34 = w34.at[:, :C].set(w3).at[:, C:C + 1].set(w4)
    b34 = jnp.zeros((1, PAD), jnp.float32)
    b34 = b34.at[:, :C].set(b3).at[:, C:C + 1].set(b4)

    return dict(
        w1=params["w1"].astype(jnp.bfloat16), b1=params["b1"].astype(jnp.float32),
        w2=params["w2"].astype(jnp.bfloat16), b2=params["b2"].astype(jnp.float32),
        w34=w34.astype(jnp.bfloat16), b34=b34,
    )


@functools.partial(jax.jit, static_argnames=("num_classes",))
def classifier_forward(x, kparams, *, num_classes):
    """x: (B, in_features) f32. kparams: prepare_params(...) output. Returns (dist, score)."""
    w1, b1 = kparams["w1"], kparams["b1"]
    w2, b2 = kparams["w2"], kparams["b2"]
    w34, b34 = kparams["w34"], kparams["b34"]

    B, in_features = x.shape
    C = num_classes

    # Batch tiling: one tile for small batches; for large batches TM=512 (a multiple
    # of 128, MXU-friendly on v5e too) which guarantees >=2 grid steps so the
    # "parallel" axis shards across both TensorCores on v7x.
    B8 = _round_up(B, 8)
    TM = B8 if B8 <= 512 else 512
    B_pad = _round_up(B8, TM)
    if B_pad != B:
        x = jnp.pad(x, ((0, B_pad - B), (0, 0)))

    grid = (B_pad // TM,)

    # VMEM budget: tiles (double-buffered) + resident weights + activation headroom.
    weight_bytes = (w1.size + w2.size + w34.size) * 2 + (b1.size + b2.size + b34.size) * 4
    tile_bytes = TM * in_features * 4 + TM * PAD * 4
    vmem_est = 2 * tile_bytes + 2 * weight_bytes + TM * (H1 + H2 + PAD) * 4 + (4 << 20)
    vmem_limit = int(min(max(vmem_est, 32 << 20), 64 << 20))
    # TODO(synk): for very large in_features (w1 approaching the VMEM limit, esp. on
    # v7x/v5e), add a K-tiling grid axis over in_features with an f32 accumulator
    # instead of keeping w1 fully resident.

    flops = 2 * B_pad * (in_features * H1 + H1 * H2 + H2 * PAD)
    bytes_accessed = (
        x.size * 4 + w1.size * 2 + w2.size * 2 + w34.size * 2
        + (b1.size + b2.size + b34.size) * 4 + B_pad * PAD * 4)
    cost = pl.CostEstimate(flops=flops,
                           transcendentals=2 * B_pad * PAD,   # one exp + one recip
                           bytes_accessed=bytes_accessed)

    slab = pl.pallas_call(
        functools.partial(classifier_kernel, C),
        out_shape=jax.ShapeDtypeStruct((B_pad, PAD), jnp.float32),
        grid=grid,
        in_specs=[
            pl.BlockSpec((TM, in_features), lambda i: (i, 0)),   # x: tiled over batch
            pl.BlockSpec(w1.shape, lambda i: (0, 0)),            # weights: VMEM-resident
            pl.BlockSpec(b1.shape, lambda i: (0, 0)),
            pl.BlockSpec(w2.shape, lambda i: (0, 0)),
            pl.BlockSpec(b2.shape, lambda i: (0, 0)),
            pl.BlockSpec(w34.shape, lambda i: (0, 0)),
            pl.BlockSpec(b34.shape, lambda i: (0, 0)),
        ],
        out_specs=pl.BlockSpec((TM, PAD), lambda i: (i, 0)),
        compiler_params=pltpu.CompilerParams(
            dimension_semantics=("parallel",),
            vmem_limit_bytes=vmem_limit),
        cost_estimate=cost,
    )(x, w1, b1, w2, b2, w34, b34)

    # Slices fuse into the jitted graph (no standalone HBM re-copy pass).
    dist = slab[:B, :C]
    score = slab[:B, C:C + 1]
    return dist, score


def init_params(key, in_features, num_classes):
    """Deterministic init mimicking PyTorch Linear default (U[-1/sqrt(fan_in), +])."""
    def linear(key, fan_in, fan_out):
        kw, kb = jax.random.split(key)
        bound = 1.0 / jnp.sqrt(jnp.float32(fan_in))
        w = jax.random.uniform(kw, (fan_in, fan_out), jnp.float32, -bound, bound)
        b = jax.random.uniform(kb, (1, fan_out), jnp.float32, -bound, bound)
        return w, b

    k1, k2, k3, k4 = jax.random.split(key, 4)
    w1, b1 = linear(k1, in_features, H1)
    w2, b2 = linear(k2, H1, H2)
    w3, b3 = linear(k3, H2, num_classes)
    w4, b4 = linear(k4, H2, 1)
    return dict(w1=w1, b1=b1, w2=w2, b2=b2, w3=w3, b3=b3, w4=w4, b4=b4)


def classifier_reference(x, params):
    """Pure-JAX f32 reference of the PyTorch forward."""
    h = jnp.maximum(x @ params["w1"] + params["b1"], 0.0)
    h = jnp.maximum(h @ params["w2"] + params["b2"], 0.0)
    dist = jax.nn.softmax(h @ params["w3"] + params["b3"], axis=-1)
    score = jax.nn.sigmoid(h @ params["w4"] + params["b4"])
    return dist, score


if __name__ == "__main__":
    key = jax.random.PRNGKey(0)
    kx, kp = jax.random.split(key)

    batch = 8
    in_features = 32
    num_classes = 10

    x = jax.random.normal(kx, (batch, in_features), jnp.float32)
    params = init_params(kp, in_features, num_classes)
    kparams = prepare_params(params)   # one-time fusion + bf16 casts (not per call)

    dist, score = classifier_forward(x, kparams, num_classes=num_classes)
    dist, score = jax.block_until_ready((dist, score))

    assert dist.shape == (batch, num_classes)
    assert score.shape == (batch, 1)

    # Compare against the pure-JAX f32 reference (tolerance covers bf16 MXU
    # operands + approx EUP reciprocal inside the kernel).
    dist_ref, score_ref = classifier_reference(x, params)
    assert jnp.allclose(dist, dist_ref, atol=3e-2, rtol=3e-2)
    assert jnp.allclose(score, score_ref, atol=3e-2, rtol=3e-2)
    assert jnp.allclose(jnp.sum(dist, axis=-1), 1.0, atol=2e-2)

    print("KERNEL_OK")
</pallas_src>

<mosaic_0001>
module attributes {stable_mosaic.version = 11 : i64} {
  func.func @classifier_kernel(%arg0: i32, %arg1: memref<8x32xf32, #tpu.memory_space<vmem>>, %arg2: memref<32x256xbf16, #tpu.memory_space<vmem>>, %arg3: memref<1x256xf32, #tpu.memory_space<vmem>>, %arg4: memref<256x128xbf16, #tpu.memory_space<vmem>>, %arg5: memref<1x128xf32, #tpu.memory_space<vmem>>, %arg6: memref<128x128xbf16, #tpu.memory_space<vmem>>, %arg7: memref<1x128xf32, #tpu.memory_space<vmem>>, %arg8: memref<8x128xf32, #tpu.memory_space<vmem>>) attributes {dimension_semantics = [#tpu.dimension_semantics<parallel>], iteration_bounds = array<i64: 1>, scalar_prefetch = 0 : i64, scratch_operands = 0 : i64, tpu.core_type = #tpu.core_type<tc>, window_params = [{transform_indices = @transform_0, window_bounds = array<i64: 8, 32>}, {pipeline_mode = #tpu.pipeline_mode<synchronous>, transform_indices = @transform_1, window_bounds = array<i64: 32, 256>}, {pipeline_mode = #tpu.pipeline_mode<synchronous>, transform_indices = @transform_2, window_bounds = array<i64: 1, 256>}, {pipeline_mode = #tpu.pipeline_mode<synchronous>, transform_indices = @transform_3, window_bounds = array<i64: 256, 128>}, {pipeline_mode = #tpu.pipeline_mode<synchronous>, transform_indices = @transform_4, window_bounds = array<i64: 1, 128>}, {pipeline_mode = #tpu.pipeline_mode<synchronous>, transform_indices = @transform_5, window_bounds = array<i64: 128, 128>}, {pipeline_mode = #tpu.pipeline_mode<synchronous>, transform_indices = @transform_6, window_bounds = array<i64: 1, 128>}, {transform_indices = @transform_7, window_bounds = array<i64: 8, 128>}]} {
    %c0 = arith.constant 0 : index
    %c0_0 = arith.constant 0 : index
    %0 = vector.load %arg1[%c0, %c0_0] : memref<8x32xf32, #tpu.memory_space<vmem>>, vector<8x32xf32>
    %1 = arith.truncf %0 : vector<8x32xf32> to vector<8x32xbf16>
    %c0_1 = arith.constant 0 : index
    %c0_2 = arith.constant 0 : index
    %2 = vector.load %arg2[%c0_1, %c0_2] : memref<32x256xbf16, #tpu.memory_space<vmem>>, vector<32x256xbf16>
    %cst = arith.constant dense<0.000000e+00> : vector<8x256xf32>
    %3 = tpu.matmul %1, %2, %cst {dimension_numbers = #tpu.dot_dimension_numbers<[1], [0], [0], [1], [0, 0, 1, 1], [], []>} : vector<8x32xbf16>, vector<32x256xbf16>, vector<8x256xf32> -> vector<8x256xf32>
    %c0_3 = arith.constant 0 : index
    %c0_4 = arith.constant 0 : index
    %4 = vector.load %arg3[%c0_3, %c0_4] : memref<1x256xf32, #tpu.memory_space<vmem>>, vector<1x256xf32>
    %5 = vector.broadcast %4 : vector<1x256xf32> to vector<8x256xf32>
    %6 = arith.addf %3, %5 : vector<8x256xf32>
    %cst_5 = arith.constant 0.000000e+00 : f32
    %7 = vector.broadcast %cst_5 : f32 to vector<8x256xf32>
    %8 = arith.maximumf %6, %7 : vector<8x256xf32>
    %9 = arith.truncf %8 : vector<8x256xf32> to vector<8x256xbf16>
    %c0_6 = arith.constant 0 : index
    %c0_7 = arith.constant 0 : index
    %10 = vector.load %arg4[%c0_6, %c0_7] : memref<256x128xbf16, #tpu.memory_space<vmem>>, vector<256x128xbf16>
    %cst_8 = arith.constant dense<0.000000e+00> : vector<8x128xf32>
    %11 = tpu.matmul %9, %10, %cst_8 {dimension_numbers = #tpu.dot_dimension_numbers<[1], [0], [0], [1], [0, 0, 1, 1], [], []>} : vector<8x256xbf16>, vector<256x128xbf16>, vector<8x128xf32> -> vector<8x128xf32>
    %c0_9 = arith.constant 0 : index
    %c0_10 = arith.constant 0 : index
    %12 = vector.load %arg5[%c0_9, %c0_10] : memref<1x128xf32, #tpu.memory_space<vmem>>, vector<1x128xf32>
    %13 = vector.broadcast %12 : vector<1x128xf32> to vector<8x128xf32>
    %14 = arith.addf %11, %13 : vector<8x128xf32>
    %cst_11 = arith.constant 0.000000e+00 : f32
    %15 = vector.broadcast %cst_11 : f32 to vector<8x128xf32>
    %16 = arith.maximumf %14, %15 : vector<8x128xf32>
    %17 = arith.truncf %16 : vector<8x128xf32> to vector<8x128xbf16>
    %c0_12 = arith.constant 0 : index
    %c0_13 = arith.constant 0 : index
    %18 = vector.load %arg6[%c0_12, %c0_13] : memref<128x128xbf16, #tpu.memory_space<vmem>>, vector<128x128xbf16>
    %cst_14 = arith.constant dense<0.000000e+00> : vector<8x128xf32>
    %19 = tpu.matmul %17, %18, %cst_14 {dimension_numbers = #tpu.dot_dimension_numbers<[1], [0], [0], [1], [0, 0, 1, 1], [], []>} : vector<8x128xbf16>, vector<128x128xbf16>, vector<8x128xf32> -> vector<8x128xf32>
    %c0_15 = arith.constant 0 : index
    %c0_16 = arith.constant 0 : index
    %20 = vector.load %arg7[%c0_15, %c0_16] : memref<1x128xf32, #tpu.memory_space<vmem>>, vector<1x128xf32>
    %21 = vector.broadcast %20 : vector<1x128xf32> to vector<8x128xf32>
    %22 = arith.addf %19, %21 : vector<8x128xf32>
    %23 = tpu.iota {dimensions = array<i32: 1>} : vector<8x128xi32>
    %c10_i32 = arith.constant 10 : i32
    %24 = vector.broadcast %c10_i32 : i32 to vector<8x128xi32>
    %25 = arith.cmpi slt, %23, %24 : vector<8x128xi32>
    %c10_i32_17 = arith.constant 10 : i32
    %26 = vector.broadcast %c10_i32_17 : i32 to vector<8x128xi32>
    %27 = arith.cmpi eq, %23, %26 : vector<8x128xi32>
    %cst_18 = arith.constant -1.000000e+30 : f32
    %28 = vector.broadcast %cst_18 : f32 to vector<8x128xf32>
    %29 = arith.select %25, %22, %28 : vector<8x128xi1>, vector<8x128xf32>
    %cst_19 = arith.constant dense<0xFF800000> : vector<8xf32>
    %30 = vector.multi_reduction <maximumf>, %29, %cst_19 [1] : vector<8x128xf32> to vector<8xf32>
    %31 = vector.shape_cast %30 : vector<8xf32> to vector<8x1xf32>
    %32 = vector.broadcast %31 : vector<8x1xf32> to vector<8x128xf32>
    %33 = arith.subf %22, %32 : vector<8x128xf32>
    %34 = math.absf %22 : vector<8x128xf32>
    %cst_20 = arith.constant 0.000000e+00 : f32
    %35 = vector.broadcast %cst_20 : f32 to vector<8x128xf32>
    %36 = arith.subf %35, %34 : vector<8x128xf32>
    %cst_21 = arith.constant -1.000000e+30 : f32
    %37 = vector.broadcast %cst_21 : f32 to vector<8x128xf32>
    %38 = arith.select %27, %36, %37 : vector<8x128xi1>, vector<8x128xf32>
    %39 = arith.select %25, %33, %38 : vector<8x128xi1>, vector<8x128xf32>
    %40 = math.exp %39 : vector<8x128xf32>
    %cst_22 = arith.constant 0.000000e+00 : f32
    %41 = vector.broadcast %cst_22 : f32 to vector<8x128xf32>
    %42 = arith.select %25, %40, %41 : vector<8x128xi1>, vector<8x128xf32>
    %cst_23 = arith.constant dense<0.000000e+00> : vector<8xf32>
    %43 = vector.multi_reduction <add>, %42, %cst_23 [1] : vector<8x128xf32> to vector<8xf32>
    %44 = vector.shape_cast %43 : vector<8xf32> to vector<8x1xf32>
    %cst_24 = arith.constant 0.000000e+00 : f32
    %45 = vector.broadcast %cst_24 : f32 to vector<8x128xf32>
    %46 = arith.cmpf oge, %22, %45 : vector<8x128xf32>
    %47 = arith.andi %27, %46 : vector<8x128xi1>
    %cst_25 = arith.constant 1.000000e+00 : f32
    %48 = vector.broadcast %cst_25 : f32 to vector<8x128xf32>
    %49 = arith.select %47, %48, %40 : vector<8x128xi1>, vector<8x128xf32>
    %cst_26 = arith.constant 1.000000e+00 : f32
    %50 = vector.broadcast %cst_26 : f32 to vector<8x128xf32>
    %51 = arith.addf %50, %40 : vector<8x128xf32>
    %52 = vector.shape_cast %44 : vector<8x1xf32> to vector<8x1xf32>
    %53 = vector.broadcast %52 : vector<8x1xf32> to vector<8x128xf32>
    %54 = arith.select %27, %51, %53 : vector<8x128xi1>, vector<8x128xf32>
    %55 = tpu.reciprocal %54 {approx = true} : vector<8x128xf32> -> vector<8x128xf32>
    %56 = arith.mulf %49, %55 : vector<8x128xf32>
    %c0_27 = arith.constant 0 : index
    %c0_28 = arith.constant 0 : index
    %57 = vector.load %arg8[%c0_27, %c0_28] : memref<8x128xf32, #tpu.memory_space<vmem>>, vector<8x128xf32>
    tpu.vector_store %arg8[%c0_27, %c0_28], %56 {strides = array<i32>} : memref<8x128xf32, #tpu.memory_space<vmem>>, vector<8x128xf32>,
    return
  }
  func.func @transform_0(%arg0: i32) -> (i32, i32) {
    %c0_i32 = arith.constant 0 : i32
    %c0_i32_0 = arith.constant 0 : i32
    return %arg0, %c0_i32 : i32, i32
  }
  func.func @transform_1(%arg0: i32) -> (i32, i32) {
    %c0_i32 = arith.constant 0 : i32
    %c0_i32_0 = arith.constant 0 : i32
    %c0_i32_1 = arith.constant 0 : i32
    return %c0_i32, %c0_i32_0 : i32, i32
  }
  func.func @transform_2(%arg0: i32) -> (i32, i32) {
    %c0_i32 = arith.constant 0 : i32
    %c0_i32_0 = arith.constant 0 : i32
    %c0_i32_1 = arith.constant 0 : i32
    return %c0_i32, %c0_i32_0 : i32, i32
  }
  func.func @transform_3(%arg0: i32) -> (i32, i32) {
    %c0_i32 = arith.constant 0 : i32
    %c0_i32_0 = arith.constant 0 : i32
    %c0_i32_1 = arith.constant 0 : i32
    return %c0_i32, %c0_i32_0 : i32, i32
  }
  func.func @transform_4(%arg0: i32) -> (i32, i32) {
    %c0_i32 = arith.constant 0 : i32
    %c0_i32_0 = arith.constant 0 : i32
    %c0_i32_1 = arith.constant 0 : i32
    return %c0_i32, %c0_i32_0 : i32, i32
  }
  func.func @transform_5(%arg0: i32) -> (i32, i32) {
    %c0_i32 = arith.constant 0 : i32
    %c0_i32_0 = arith.constant 0 : i32
    %c0_i32_1 = arith.constant 0 : i32
    return %c0_i32, %c0_i32_0 : i32, i32
  }
  func.func @transform_6(%arg0: i32) -> (i32, i32) {
    %c0_i32 = arith.constant 0 : i32
    %c0_i32_0 = arith.constant 0 : i32
    %c0_i32_1 = arith.constant 0 : i32
    return %c0_i32, %c0_i32_0 : i32, i32
  }
  func.func @transform_7(%arg0: i32) -> (i32, i32) {
    %c0_i32 = arith.constant 0 : i32
    %c0_i32_0 = arith.constant 0 : i32
    return %arg0, %c0_i32 : i32, i32
  }
}

</mosaic_0001>

<bundles_post_ra>
// kernel: classifier_forward.1
= control target key start
LH: loop header
LB: loop body
LE: loop exit
PB: predicated region body
PF: predicated region fallthrough
CT: control target
= control target key end

     0   :  { %12 = vsyncpa [#allocation3], 0  ;;  %s817_s0 = inlined_call_operand.hbm [shape: f32[8,32], index: 0, kind: input, shape index: {}]   ;;  %s818_s1 = inlined_call_operand.hbm [shape: bf16[32,256], index: 1, kind: input, shape index: {}]   ;;  %s819_s2 = inlined_call_operand.hbm [shape: f32[1,256], index: 2, kind: input, shape index: {}]   ;;  %s820_s3 = inlined_call_operand.hbm [shape: bf16[256,128], index: 3, kind: input, shape index: {}]   ;;  %s821_s4 = inlined_call_operand.vmem [shape: f32[1,128], index: 4, kind: input, shape index: {}]   ;;  %s822_s5 = inlined_call_operand.hbm [shape: bf16[128,128], index: 5, kind: input, shape index: {}]   ;;  %s823_s6 = inlined_call_operand.vmem [shape: f32[1,128], index: 6, kind: input, shape index: {}]   ;;  %s824_s7 = inlined_call_operand.vmem [shape: f32[8,128], index: 7, kind: output, shape index: {}]  }
   0x1   :  { %13 = vsyncpa [#allocation5], 0 }
   0x2   :  { %14 = vsyncpa [#allocation8], 0  ;;  %s732_s24 = smov [#allocation4]  }
   0x3   :  { %s30_s25 = sshll.u32 %s732_s24, 4  ;;  %s31_s25 = int_to_ptr.vmem [resolvable:$true] %s30_s25 }
   0x4   :  { %s634_s26 = scalar_lea.vmem %s31_s25, 512  ;;  %p639_p1 = scmp.lt.s32.totalorder %s31_s25, %s31_s25 }
   0x5   :  { %p635_p0 = scmp.ne.s32.totalorder %s31_s25, %s634_s26  ;;  %p640_p2 = scmp.lt.s32.totalorder %s634_s26, %s634_s26 }
   0x7   :  { %p641_p3 = por %p640_p2, %p639_p1 }
   0x9   :  { %p642_p4 = pnand %p641_p3, %p635_p0 }
   0xb   :  { %645 = shalt.err (!%p642_p4)
}
   0xc   :  { %s733_s27 = smov 128   ;;  %s734_s28 = smov 8  }
   0xd   :  { %36 = dma.hbm_to_vmem [thread:$0]  %s818_s1, 512, %s31_s25, [#allocation5], %s733_s27, %s733_s27, %s734_s28  }
   0xe   :  { %s735_s8 = smov [#allocation7]  }
   0xf   :  { %s52_s9 = sshll.u32 %s735_s8, 4  ;;  %s53_s9 = int_to_ptr.vmem [resolvable:$true] %s52_s9 }
  0x10   :  { %s654_s10 = scalar_lea.vmem %s53_s9, 2048  ;;  %p659_p6 = scmp.lt.s32.totalorder %s53_s9, %s53_s9 }
  0x11   :  { %p655_p5 = scmp.ne.s32.totalorder %s53_s9, %s654_s10  ;;  %p660_p7 = scmp.lt.s32.totalorder %s654_s10, %s654_s10 }
  0x13   :  { %p661_p8 = por %p660_p7, %p659_p6 }
  0x15   :  { %p662_p9 = pnand %p661_p8, %p655_p5 }
  0x17   :  { %665 = shalt.err (!%p662_p9)
}
  0x18   :  { %s736_s11 = smov 64   ;;  %s737_s12 = smov 4  }
  0x19   :  { %58 = dma.hbm_to_vmem [thread:$0]  %s820_s3, 2048, %s53_s9, [#allocation8], %s736_s11, %s736_s11, %s737_s12  }
  0x1a   :  { %s738_s1 = smov [#allocation2]   ;;  %s739_s16 = smov [#allocation6]  }
  0x1b   :  { %s21_s15 = sshll.u32 %s738_s1, 4  ;;  %s43_s17 = sshll.u32 %s739_s16, 4  ;;  %s22_s15 = int_to_ptr.vmem [resolvable:$true] %s21_s15  ;;  %s44_s17 = int_to_ptr.vmem [resolvable:$true] %s43_s17 }
  0x1c   :  { %s674_s18 = scalar_lea.vmem %s22_s15, 128  ;;  %p679_p11 = scmp.lt.s32.totalorder %s22_s15, %s22_s15 }
  0x1d   :  { %p675_p10 = scmp.ne.s32.totalorder %s22_s15, %s674_s18  ;;  %p680_p12 = scmp.lt.s32.totalorder %s674_s18, %s674_s18 }
  0x1f   :  { %p681_p13 = por %p680_p12, %p679_p11 }
  0x21   :  { %p682_p0 = pnand %p681_p13, %p675_p10 }
  0x23   :  { %685 = shalt.err (!%p682_p0)
}
  0x24   :  { %24 = dma.hbm_to_vmem [thread:$0]  %s817_s0, 128, %s22_s15, [#allocation3]  }
  0x25   :  { %s694_s21 = scalar_lea.vmem %s44_s17, 32  ;;  %p699_p2 = scmp.lt.s32.totalorder %s44_s17, %s44_s17 }
  0x26   :  { %p695_p1 = scmp.ne.s32.totalorder %s44_s17, %s694_s21  ;;  %p700_p3 = scmp.lt.s32.totalorder %s694_s21, %s694_s21 }
  0x28   :  { %p701_p4 = por %p700_p3, %p699_p2 }
  0x2a   :  { %p702_p5 = pnand %p701_p4, %p695_p1 }
  0x2c   :  { %705 = shalt.err (!%p702_p5)
}
  0x2d   :  { %46 = dma.hbm_to_vmem [thread:$0]  %s819_s2, 32, %s44_s17, [#allocation5]  }
  0x2e   :  { %s740_s23 = smov [#allocation9]  }
  0x2f   :  { %s66_s24 = sshll.u32 %s740_s23, 4  ;;  %s67_s24 = int_to_ptr.vmem [resolvable:$true] %s66_s24 }
  0x30   :  { %s714_s25 = scalar_lea.vmem %s67_s24, 1024  ;;  %p719_p7 = scmp.lt.s32.totalorder %s67_s24, %s67_s24 }
  0x31   :  { %p715_p6 = scmp.ne.s32.totalorder %s67_s24, %s714_s25  ;;  %p720_p8 = scmp.lt.s32.totalorder %s714_s25, %s714_s25 }
  0x33   :  { %p721_p9 = por %p720_p8, %p719_p7 }
  0x35   :  { %p722_p10 = pnand %p721_p9, %p715_p6 }
  0x37   :  { %725 = shalt.err (!%p722_p10)
}
  0x38   :  { %72 = dma.hbm_to_vmem [thread:$0]  %s822_s5, 1024, %s67_s24, [#allocation8], %s736_s11, %s736_s11, %s737_s12  }
  0x39   :  { %726 = dma.done.wait [#allocation3], 128  }
  0x3a   :  { %727 = vsyncadd [#allocation3], 4294967168 }
  0x3b   :  { %728 = dma.done.wait [#allocation5], 544  }
  0x3c   :  { %729 = vsyncadd [#allocation5], 4294966752 }
  0x3d   :  { %730 = dma.done.wait [#allocation8], 3072  }
  0x3e   :  { %731 = vsyncadd [#allocation8], 4294964224  ;;  %v741_v0 = vmov 0   ;;  %v592_v1 = vld [vmem:[#allocation4 + $0x14] ss:$8 sps:$4 sm:$0xff]   ;;  %vm129_vm0 = vcmask 261120   ;;  %v99_v29 = vlaneseq }
  0x3f   :  { %165 = vmatprep.mubr.bf16.mxu0 %v741_v0  ;;  %v594_v2 = vld [vmem:[#allocation4 + $0x10] ss:$8 sps:$4 sm:$0xff]   ;;  %145 = vmatprep.subr.bf16.mxu0 %v592_v1  ;;  %v595_v3 = vld [vmem:[#allocation4 + $0x4] ss:$8 sps:$4 sm:$0xff]   ;;  %v597_v4 = vld [vmem:[#allocation4] ss:$8 sps:$4 sm:$0xff]  }
  0x40   :  { %v91_v5 = vld [vmem:[#allocation2] sm:$0xff]  ;;  %146 = vmatpush1.bf16.msra.mxu0 %v594_v2  ;;  %v602_v11 = vld [vmem:[#allocation7 + $0x68] sm:$0xff]   ;;  %v604_v13 = vld [vmem:[#allocation7 + $0x60] sm:$0xff]   ;;  %v742_v24 = vmov 0.0   ;;  %v100_v30 = vshrl.u32 %v99_v29, 7  ;;  %vm743_vm1 = vmmov 0  }
  0x41   :  { %v598_v6 = vld [vmem:[#allocation7 + $0x78] sm:$0xff]   ;;  %147 = vmatprep.subr.bf16.mxu0 %v595_v3  ;;  %v600_v8 = vld [vmem:[#allocation7 + $0x70] sm:$0xff]   ;;  %v92_v9 = vpack.c.bf16 %v91_v5, %v91_v5  ;;  %v603_v12 = vld [vmem:[#allocation7 + $0x28] sm:$0xff]   ;;  %v467_v58 = vand.u32 127, %v99_v29 }
  0x42   :  { %v599_v7 = vld [vmem:[#allocation7 + $0x38] sm:$0xff]   ;;  %529 = vmatprep.subr.bf16.mxu1 %v598_v6  ;;  %v601_v10 = vld [vmem:[#allocation7 + $0x30] sm:$0xff]   ;;  %v605_v14 = vld [vmem:[#allocation7 + $0x20] sm:$0xff]   ;;  %v101_v31 = vsub.s32 0, %v100_v30  ;;  %v105_v33 = vsub.s32 1, %v100_v30 }
  0x43   :  { %530 = vmatpush3.bf16.msra.mxu1 %v599_v7  ;;  %v606_v15 = vld [vmem:[#allocation7 + $0x58] sm:$0xff]   ;;  %v608_v17 = vld [vmem:[#allocation7 + $0x50] sm:$0xff]   ;;  %v610_v19 = vld [vmem:[#allocation7 + $0x48] sm:$0xff]   ;;  %vm468_vm2 = vcmp.lt.s32.totalorder %v467_v58, 10  ;;  %vm469_vm3 = vcmp.eq.s32.totalorder %v467_v58, 10 }
  0x44   :  { %148 = vmatpush1.bf16.msra.mxu0 %v597_v4  ;;  %531 = vmatprep.subr.bf16.mxu1 %v600_v8  ;;  %v607_v16 = vld [vmem:[#allocation7 + $0x18] sm:$0xff]   ;;  %v609_v18 = vld [vmem:[#allocation7 + $0x10] sm:$0xff]   ;;  %v611_v20 = vld [vmem:[#allocation7 + $0x8] sm:$0xff]  }
  0x45   :  { %v612_v21 = vld [vmem:[#allocation7 + $0x40] sm:$0xff]   ;;  %v614_v23 = vld [vmem:[#allocation9 + $0x38] sm:$0xff]   ;;  %560 = vmatprep.subr.bf16.mxu0 %v742_v24  ;;  %v615_v25 = vld [vmem:[#allocation9 + $0x30] sm:$0xff]  }
  0x46   :  { %v613_v22 = vld [vmem:[#allocation7] sm:$0xff]   ;;  %v616_v26 = vld [vmem:[#allocation9 + $0x28] sm:$0xff]   ;;  %v618_v28 = vld [vmem:[#allocation9 + $0x18] sm:$0xff]  }
  0x47   :  { %502 = vmatmul.mubr.msk.bf16.vlgmr.msra.gmra.mxu0 %vm129_vm0, %v92_v9  ;;  %532 = vmatpush3.bf16.msra.mxu1 %v601_v10  ;;  %v617_v27 = vld [vmem:[#allocation9 + $0x20] sm:$0xff]   ;;  %v97_v32 = vld [vmem:[#allocation6] sm:$0x3]  ;;  %v619_v46 = vld [vmem:[#allocation9 + $0x10] sm:$0xff]  }
  0x48   :  { %533 = vmatprep.subr.bf16.mxu1 %v602_v11  ;;  %561 = vmatpush3.bf16.msra.mxu0 %v614_v23  ;;  %v102_v34 = vrot.slane %v97_v32, %v101_v31  ;;  %v106_v35 = vrot.slane %v97_v32, %v105_v33  ;;  %v620_v47 = vld [vmem:[#allocation9 + $0x8] sm:$0xff]   ;;  %v621_v48 = vld [vmem:[#allocation9] sm:$0xff]   ;;  %v503_v50 = vld [vmem:[%s821_s4] ss:$0 sm:$0xff] }
  0x49   :  { %562 = vmatprep.subr.bf16.mxu0 %v742_v24  ;;  %576 = vmatprep.mubr.msk.bf16.mxu0 %vm743_vm1, %v742_v24  ;;  %v520_v59 = vld [vmem:[%s823_s6] ss:$0 sm:$0xff] }
  0x4b   :  { %534 = vmatpush3.bf16.msra.mxu1 %v603_v12 }
  0x4c   :  { %535 = vmatprep.subr.bf16.mxu1 %v604_v13  ;;  %563 = vmatpush3.bf16.msra.mxu0 %v615_v25 }
  0x4d   :  { %564 = vmatprep.subr.bf16.mxu0 %v742_v24 }
  0x4f   :  { %536 = vmatpush3.bf16.msra.mxu1 %v605_v14 }
  0x50   :  { %537 = vmatprep.subr.bf16.mxu1 %v606_v15  ;;  %565 = vmatpush3.bf16.msra.mxu0 %v616_v26 }
  0x51   :  { %566 = vmatprep.subr.bf16.mxu0 %v742_v24 }
  0x53   :  { %538 = vmatpush3.bf16.msra.mxu1 %v607_v16 }
  0x54   :  { %539 = vmatprep.subr.bf16.mxu1 %v608_v17  ;;  %567 = vmatpush3.bf16.msra.mxu0 %v617_v27 }
  0x55   :  { %568 = vmatprep.subr.bf16.mxu0 %v742_v24 }
  0x57   :  { %540 = vmatpush3.bf16.msra.mxu1 %v609_v18 }
  0x58   :  { %541 = vmatprep.subr.bf16.mxu1 %v610_v19  ;;  %569 = vmatpush3.bf16.msra.mxu0 %v618_v28 }
  0x59   :  { %570 = vmatprep.subr.bf16.mxu0 %v742_v24 }
  0x5b   :  { %542 = vmatpush3.bf16.msra.mxu1 %v611_v20 }
  0x5c   :  { %543 = vmatprep.subr.bf16.mxu1 %v612_v21  ;;  %571 = vmatpush3.bf16.msra.mxu0 %v619_v46 }
  0x5d   :  { %572 = vmatprep.subr.bf16.mxu0 %v742_v24 }
  0x5f   :  { %544 = vmatpush3.bf16.msra.mxu1 %v613_v22 }
  0x60   :  { %573 = vmatpush3.bf16.msra.mxu0 %v620_v47 }
  0x61   :  { %574 = vmatprep.subr.bf16.mxu0 %v742_v24 }
  0x64   :  { %575 = vmatpush3.bf16.msra.mxu0 %v621_v48 }
 0x107   :  { %v167_v36 = vpop.f32.mrf.mxu0 }
 0x108   :  { %v168_v37 = vadd.f32 %v167_v36, %v102_v34 }
 0x109   :  { %v169_v38 = vpop.f32.mrf.mxu0 }
 0x10a   :  { %v170_v39 = vadd.f32 %v169_v38, %v106_v35  ;;  %v174_v40 = vmax.f32 %v168_v37, 0.0 }
 0x10b   :  { %v171_v41 = vpop.f32.mrf.mxu0 }
 0x10c   :  { %v175_v42 = vmax.f32 %v170_v39, 0.0  ;;  %v176_v45 = vpack.c.bf16 %v174_v40, %v174_v40 }
 0x10d   :  { %v172_v43 = vpop.f32.mrf.mxu0 }
 0x10e   :  { %v177_v44 = vpack.c.bf16 %v175_v42, %v175_v42 }
 0x110   :  { %345 = vmatprep.mubr.bf16.mxu1 %v177_v44 }
 0x111   :  { %346 = vmatmul.mubr.bf16.vlgmr.msra.gmra.mxu1 %v176_v45 }
 0x1d1   :  { %v545_v49 = vpop.f32.mrf.mxu1 }
 0x1d3   :  { %v546_v51 = vpop.f32.mrf.mxu1 }
 0x1d4   :  { %v547_v52 = vadd.f32 %v546_v51, %v545_v49 }
 0x1d5   :  { %v548_v53 = vpop.f32.mrf.mxu1 }
 0x1d6   :  { %v348_v54 = vadd.f32 %v547_v52, %v503_v50 }
 0x1d7   :  { %v549_v55 = vpop.f32.mrf.mxu1 }
 0x1d8   :  { %v353_v56 = vmax.f32 %v348_v54, 0.0 }
 0x1da   :  { %v354_v57 = vpack.c.bf16 %v353_v56, %v353_v56 }
 0x1dc   :  { %577 = vmatmul.mubr.bf16.vlgmr.msra.gmra.mxu0 %v354_v57 }
 0x29c   :  { %v460_v60 = vpop.f32.mrf.mxu0 }
 0x29d   :  { %v461_v61 = vadd.f32 %v520_v59, %v460_v60 }
 0x29e   :  { %v578_v62 = vpop.f32.mrf.mxu0 }
 0x29f   :  { %v470_v63 = vsel %vm468_vm2, %v461_v61, -1e+30  ;;  %v474_v2 = vand.u32 2147483647, %v461_v61  ;;  %vm483_vm4 = vcmp.ge.f32.partialorder %v461_v61, 0.0 }
 0x2a0   :  { %471 = vmax.xlane.f32.xlu0 %v470_v63  ;;  %v463_v0 = vpop.f32.mrf.mxu0  ;;  %vm484_vm5 = vmand %vm469_vm3, %vm483_vm4 }
 0x2a1   :  { %v475_v3 = vsub.f32 0.0, %v474_v2 }
 0x2a2   :  { %v579_v1 = vpop.f32.mrf.mxu0 }
 0x2a3   :  { %v476_v6 = vsel %vm469_vm3, %v475_v3, -1e+30 }
 0x329   :  { %v472_v4 = vpop.xlane.xlu0 %471 }
 0x32a   :  { %v473_v5 = vsub.f32 %v461_v61, %v472_v4 }
 0x32c   :  { %v477_v7 = vsel %vm468_vm2, %v473_v5, %v476_v6 }
 0x32d   :  { %v478_v8 = vmul.f32 1.442695, %v477_v7 }
 0x32f   :  { %622 = vpow2.f32 %v478_v8 }
 0x33c   :  { %v623_v9 = vpop.eup %622 }
 0x33d   :  { %v480_v10 = vsel %vm468_vm2, %v623_v9, 0.0  ;;  %v486_v11 = vadd.f32 1.0, %v623_v9  ;;  %v485_v15 = vsel %vm484_vm5, 1.0, %v623_v9 }
 0x33e   :  { %481 = vadd.xlane.f32.xlu0 %v480_v10 }
 0x3c7   :  { %v482_v12 = vpop.xlane.xlu0 %481 }
 0x3c8   :  { %v487_v13 = vsel %vm469_vm3, %v486_v11, %v482_v12 }
 0x3c9   :  { %624 = vrcp.f32 %v487_v13 }
 0x3d6   :  { %v625_v14 = vpop.eup %624 }
 0x3d7   :  { %v489_v16 = vmul.f32 %v625_v14, %v485_v15 }
 0x3d9   :  { %490 = vst [vmem:[%s824_s7] sm:$0xff] %v489_v16 }
 0x3da   :  { %495 = vsyncpa [#allocation3], 1 }
 0x3db   :  { %496 = vsyncpa [#allocation5], 1 }
 0x3dc   :  { %497 = vsyncpa [#allocation8], 1 }

</bundles_post_ra>
